<compile_context>
chip_gen: v7x
topology: tpu7x:2x2x1
jax: 0.10.0
libtpu: 0.0.40
codegen_flags: <defaults>
</compile_context>

<pallas_src>
import functools

import jax
import jax.numpy as jnp
from jax import lax
from jax.experimental import pallas as pl
from jax.experimental.pallas import tpu as pltpu


def _round_up(x, m):
    return ((x + m - 1) // m) * m


def _gathered_rows_matmul_kernel(idx_ref, ahat_hbm, xw_ref, b_ref, o_ref,
                                 row_buf, dma_sem, *, tb):
    """One grid step: DMA-gather `tb` Ahat rows (f32, straight from HBM) into a VMEM slab,
    then a single [tb, N] @ [N, E_pad] MXU matmul with an f32 bias epilogue."""
    step = pl.program_id(0)
    base = step * tb

    # Issue tb row-gather DMAs, all signalling the same DMA semaphore.
    def _issue(r, carry):
        row = idx_ref[base + r]
        pltpu.make_async_copy(ahat_hbm.at[pl.ds(row, 1)],
                              row_buf.at[pl.ds(r, 1)],
                              dma_sem.at[0]).start()
        return carry

    lax.fori_loop(0, tb, _issue, 0)

    # Wait for all tb copies: each wait consumes exactly one row-copy's worth from the shared
    # semaphore (descriptor is shape-only; same pattern as the paged-attention reference kernel).
    def _wait(r, carry):
        pltpu.make_async_copy(ahat_hbm.at[pl.ds(0, 1)],
                              row_buf.at[pl.ds(0, 1)],
                              dma_sem.at[0]).wait()
        return carry

    lax.fori_loop(0, tb, _wait, 0)

    rows = row_buf[...].astype(jnp.bfloat16)            # cast in-kernel: no O(N^2) host pre-pass
    acc = jnp.dot(rows, xw_ref[...], preferred_element_type=jnp.float32)   # [tb, E_pad] on MXU
    o_ref[...] = acc + b_ref[...]                       # f32 epilogue, bias broadcast over rows


def _rows_matmul(row_ids, ahat, xw_bf16, b_pad):
    """Compute (Ahat[row_ids] @ XW) + b with the batched-gather Pallas kernel.

    row_ids: int32 [R]; ahat: f32 [N, N] (stays in HBM); xw_bf16: bf16 [N, E_pad];
    b_pad: f32 [1, E_pad].  Returns f32 [R, E_pad].
    """
    n_rows = int(row_ids.shape[0])
    n_nodes = int(ahat.shape[0])
    e_pad = int(xw_bf16.shape[1])

    # Tile size: 256 fills the v6e/v7x MXU (and is a 128-multiple for v5e); keep the f32 row
    # slab <= ~8 MiB of VMEM; keep >= 2 grid steps so "parallel" can use both v7x TensorCores.
    tb = 256
    tb = min(tb, max(8, ((8 * 1024 * 1024) // (4 * n_nodes)) // 8 * 8))
    if n_rows >= 16:
        tb = min(tb, max(8, _round_up(-(-n_rows // 2), 8)))
    else:
        tb = max(8, _round_up(n_rows, 8))

    rows_pad = _round_up(n_rows, tb)
    num_steps = rows_pad // tb
    idx_pad = jnp.zeros((rows_pad,), jnp.int32).at[:n_rows].set(row_ids)

    # VMEM working set: f32 row slab + single-buffered bf16 XW + bias + double-buffered output.
    vmem_bytes = (4 * tb * n_nodes
                  + 2 * n_nodes * e_pad
                  + 4 * e_pad
                  + 2 * 4 * tb * e_pad)
    # v5e/v6e have 128 MiB physical VMEM (raising the scoped limit is fine there); v7x has 64 MiB.
    # TODO(synk): on v7x, if the bf16 XW alone exceeds ~48 MiB, tile it along E/N instead of
    # relying on a larger vmem_limit_bytes.
    vmem_limit = int(min(100 * 1024 * 1024, max(32 * 1024 * 1024, int(vmem_bytes * 1.5))))

    grid_spec = pltpu.PrefetchScalarGridSpec(
        num_scalar_prefetch=1,
        grid=(num_steps,),
        in_specs=[
            # Ahat stays in HBM; rows are gathered manually in the kernel.
            pl.BlockSpec(memory_space=pl.ANY),
            # Grid-invariant XW / bias: fetched once, single-buffered.
            pl.BlockSpec((n_nodes, e_pad), lambda s, idx: (0, 0),
                         pipeline_mode=pl.Buffered(1)),
            pl.BlockSpec((1, e_pad), lambda s, idx: (0, 0),
                         pipeline_mode=pl.Buffered(1)),
        ],
        out_specs=pl.BlockSpec((tb, e_pad), lambda s, idx: (s, 0)),
        scratch_shapes=[
            pltpu.VMEM((tb, n_nodes), jnp.float32),     # gathered f32 row slab
            pltpu.SemaphoreType.DMA((1,)),              # shared completion semaphore
        ],
    )

    out = pl.pallas_call(
        functools.partial(_gathered_rows_matmul_kernel, tb=tb),
        out_shape=jax.ShapeDtypeStruct((rows_pad, e_pad), jnp.float32),
        grid_spec=grid_spec,
        compiler_params=pltpu.CompilerParams(
            dimension_semantics=("parallel",),          # batched steps shard across TCs (v7x)
            vmem_limit_bytes=vmem_limit,
        ),
        cost_estimate=pl.CostEstimate(
            flops=2 * rows_pad * n_nodes * e_pad,
            transcendentals=0,
            bytes_accessed=(4 * rows_pad * n_nodes      # f32 gathered Ahat rows
                            + 2 * n_nodes * e_pad       # bf16 XW (fetched once)
                            + 4 * e_pad                 # f32 bias
                            + 4 * rows_pad * e_pad),    # f32 output
        ),
    )(idx_pad, ahat, xw_bf16, b_pad)
    return out[:n_rows]


def gce_layer_dish_ingredient(features, ahat, w, b, indices, cooccurrence_weight):
    """features:[N,F], ahat:[N,N], w:[F,E], b:[1,E] or [E], indices:int -> indices.shape + (E,)."""
    n_nodes, _ = features.shape
    emb = int(w.shape[1])
    e_pad = max(128, _round_up(emb, 128))               # lane-dense output width

    ahat = ahat.astype(jnp.float32)
    b2 = jnp.asarray(b, jnp.float32).reshape(1, emb)

    # Fold the scalar co-occurrence weight into the GCN parameters (free at trace time).
    w_eff = jnp.asarray(w, jnp.float32) * cooccurrence_weight
    b_eff = b2 * cooccurrence_weight

    # Zero-pad the embedding dim so kernel stores are full 128-lane vst (sliced off afterwards).
    w_padded = jnp.zeros((w.shape[0], e_pad), jnp.float32).at[:, :emb].set(w_eff)
    b_padded = jnp.zeros((1, e_pad), jnp.float32).at[:, :emb].set(b_eff)

    # XW is batch-independent and only F-deep: plain XLA matmul, fed to the kernel in bf16.
    xw_bf16 = (features.astype(jnp.float32) @ w_padded).astype(jnp.bfloat16)

    # TODO(synk): PyTorch indexing raises on out-of-range indices; we clamp instead, so OOB
    # lookups silently map to valid rows.
    flat_idx = jnp.clip(indices.reshape(-1).astype(jnp.int32), 0, n_nodes - 1)
    batch = int(flat_idx.shape[0])

    if batch * n_nodes * e_pad < (1 << 18):
        # Tiny problem: pallas_call launch + per-step overhead would dominate -> plain XLA
        # (same bf16 operand quantization as the kernel path).
        h = ahat.astype(jnp.bfloat16).astype(jnp.float32) @ xw_bf16.astype(jnp.float32) + b_padded
        out = jnp.take(h, flat_idx, axis=0)
    elif batch >= n_nodes:
        # Pivot: reading all of Ahat exactly once (N rows) beats gathering B >= N rows;
        # the per-lookup gather then becomes a cheap XLA take on the [N, E_pad] result.
        h = _rows_matmul(jnp.arange(n_nodes, dtype=jnp.int32), ahat, xw_bf16, b_padded)
        out = jnp.take(h, flat_idx, axis=0)
    else:
        # Batched DMA-gather kernel over the requested rows only.
        out = _rows_matmul(flat_idx, ahat, xw_bf16, b_padded)

    return out[:, :emb].reshape(indices.shape + (emb,))


def build_normalized_adjacency(n_nodes):
    """Deterministic ring graph, GCN normalization: Ahat = D^-1/2 (A + I) D^-1/2."""
    idx = jnp.arange(n_nodes)
    a = jnp.zeros((n_nodes, n_nodes), jnp.float32)
    a = a.at[idx, (idx + 1) % n_nodes].set(1.0)
    a = a.at[(idx + 1) % n_nodes, idx].set(1.0)
    a = a + jnp.eye(n_nodes, dtype=jnp.float32)          # self loops
    deg = jnp.sum(a, axis=1)
    d_inv_sqrt = 1.0 / jnp.sqrt(deg)
    return a * d_inv_sqrt[:, None] * d_inv_sqrt[None, :]


if __name__ == "__main__":
    num_nodes = 256       # dish/ingredient graph nodes
    field_dims = 32       # GCNConv in_channels
    embedding_dim = 160   # GCNConv out_channels (pads to 256 lanes)
    cooccurrence_weight = 0.5

    key = jax.random.PRNGKey(0)
    k_feat, k_w, k_b, k_idx1, k_idx2 = jax.random.split(key, 5)

    features = jax.random.normal(k_feat, (num_nodes, field_dims), dtype=jnp.float32)
    limit = float(jnp.sqrt(6.0 / (field_dims + embedding_dim)))
    w = jax.random.uniform(k_w, (field_dims, embedding_dim), jnp.float32, -limit, limit)
    b = 0.1 * jax.random.normal(k_b, (1, embedding_dim), dtype=jnp.float32)
    ahat = build_normalized_adjacency(num_nodes)

    # Full-precision semantic reference (kernel uses bf16 matmul operands -> loose tolerance).
    h_ref = ahat @ (features @ w) + b

    # (a) batch < num_nodes: exercises the batched DMA-gather kernel path (2 grid steps).
    x_small = jax.random.randint(k_idx1, (4, 40), 0, num_nodes, dtype=jnp.int32)    # 160 lookups
    out_a = gce_layer_dish_ingredient(features, ahat, w, b, x_small, cooccurrence_weight)
    out_a = jax.block_until_ready(out_a)
    ref_a = h_ref[x_small] * cooccurrence_weight
    assert out_a.shape == x_small.shape + (embedding_dim,)
    assert jnp.allclose(out_a, ref_a, atol=2e-2, rtol=2e-2), float(jnp.max(jnp.abs(out_a - ref_a)))

    # (b) batch >= num_nodes: exercises the full-rows pivot (same kernel over all N rows + take).
    x_large = jax.random.randint(k_idx2, (8, 48), 0, num_nodes, dtype=jnp.int32)    # 384 lookups
    out_b = gce_layer_dish_ingredient(features, ahat, w, b, x_large, cooccurrence_weight)
    out_b = jax.block_until_ready(out_b)
    ref_b = h_ref[x_large] * cooccurrence_weight
    assert out_b.shape == x_large.shape + (embedding_dim,)
    assert jnp.allclose(out_b, ref_b, atol=2e-2, rtol=2e-2), float(jnp.max(jnp.abs(out_b - ref_b)))

    print("KERNEL_OK")
</pallas_src>

<mosaic_0001>
module attributes {stable_mosaic.version = 11 : i64} {
  func.func @_gathered_rows_matmul_kernel(%arg0: i32, %arg1: memref<160xi32, #tpu.memory_space<smem>>, %arg2: memref<256x256xf32, #tpu.memory_space<any>>, %arg3: memref<256x256xbf16, #tpu.memory_space<vmem>>, %arg4: memref<1x256xf32, #tpu.memory_space<vmem>>, %arg5: memref<80x256xf32, #tpu.memory_space<vmem>>, %arg6: memref<80x256xf32, #tpu.memory_space<vmem>>, %arg7: memref<1x!tpu.dma_semaphore, #tpu.memory_space<semaphore_mem>>) attributes {dimension_semantics = [#tpu.dimension_semantics<parallel>], iteration_bounds = array<i64: 2>, scalar_prefetch = 1 : i64, scratch_operands = 2 : i64, tpu.core_type = #tpu.core_type<tc>, window_params = [{}, {pipeline_mode = #tpu.pipeline_mode<synchronous>, transform_indices = @transform_1, window_bounds = array<i64: 256, 256>}, {pipeline_mode = #tpu.pipeline_mode<synchronous>, transform_indices = @transform_2, window_bounds = array<i64: 1, 256>}, {transform_indices = @transform_3, window_bounds = array<i64: 80, 256>}]} {
    %c80_i32 = arith.constant 80 : i32
    %0 = arith.muli %arg0, %c80_i32 : i32
    %c0_i32 = arith.constant 0 : i32
    %c80_i32_0 = arith.constant 80 : i32
    %1 = arith.addi %c0_i32, %c80_i32_0 : i32
    %c1_i32 = arith.constant 1 : i32
    scf.for %arg8 = %c0_i32 to %1 step %c1_i32  : i32 {
      %11 = arith.addi %0, %arg8 : i32
      %12 = arith.index_cast %11 : i32 to index
      %13 = memref.load %arg1[%12] : memref<160xi32, #tpu.memory_space<smem>>
      %c0_i32_12 = arith.constant 0 : i32
      %c0_i32_13 = arith.constant 0 : i32
      %14 = tpu.memref_slice %arg2[%13, %c0_i32_13] : memref<256x256xf32, #tpu.memory_space<any>> -> memref<1x256xf32, #tpu.memory_space<any>>
      %c0_i32_14 = arith.constant 0 : i32
      %15 = tpu.memref_slice %arg6[%arg8, %c0_i32_14] : memref<80x256xf32, #tpu.memory_space<vmem>> -> memref<1x256xf32, #tpu.memory_space<vmem>>
      %16 = tpu.memref_slice %arg7[%c0_i32_12] : memref<1x!tpu.dma_semaphore, #tpu.memory_space<semaphore_mem>> -> memref<1x!tpu.dma_semaphore, #tpu.memory_space<semaphore_mem>>
      %17 = tpu.memref_squeeze %16 : memref<1x!tpu.dma_semaphore, #tpu.memory_space<semaphore_mem>> -> memref<!tpu.dma_semaphore, #tpu.memory_space<semaphore_mem>>
      tpu.enqueue_dma source(%14 : memref<1x256xf32, #tpu.memory_space<any>>) target(%15 : memref<1x256xf32, #tpu.memory_space<vmem>>) target_semaphore(%17 : memref<!tpu.dma_semaphore, #tpu.memory_space<semaphore_mem>>)
    }
    %c80_i32_1 = arith.constant 80 : i32
    %c0_i32_2 = arith.constant 0 : i32
    %c80_i32_3 = arith.constant 80 : i32
    %2 = arith.addi %c0_i32_2, %c80_i32_3 : i32
    %c1_i32_4 = arith.constant 1 : i32
    scf.for %arg8 = %c0_i32_2 to %2 step %c1_i32_4  : i32 {
      %c0_i32_12 = arith.constant 0 : i32
      %c0_i32_13 = arith.constant 0 : i32
      %c0_i32_14 = arith.constant 0 : i32
      %11 = tpu.memref_slice %arg2[%c0_i32_13, %c0_i32_14] : memref<256x256xf32, #tpu.memory_space<any>> -> memref<1x256xf32, #tpu.memory_space<any>>
      %c0_i32_15 = arith.constant 0 : i32
      %c0_i32_16 = arith.constant 0 : i32
      %12 = tpu.memref_slice %arg6[%c0_i32_15, %c0_i32_16] : memref<80x256xf32, #tpu.memory_space<vmem>> -> memref<1x256xf32, #tpu.memory_space<vmem>>
      %13 = tpu.memref_slice %arg7[%c0_i32_12] : memref<1x!tpu.dma_semaphore, #tpu.memory_space<semaphore_mem>> -> memref<1x!tpu.dma_semaphore, #tpu.memory_space<semaphore_mem>>
      %14 = tpu.memref_squeeze %13 : memref<1x!tpu.dma_semaphore, #tpu.memory_space<semaphore_mem>> -> memref<!tpu.dma_semaphore, #tpu.memory_space<semaphore_mem>>
      tpu.wait_dma2 semaphore(%14 : memref<!tpu.dma_semaphore, #tpu.memory_space<semaphore_mem>>) src(%11 : memref<1x256xf32, #tpu.memory_space<any>>) dst(%12 : memref<1x256xf32, #tpu.memory_space<vmem>>)
    }
    %c0 = arith.constant 0 : index
    %c0_5 = arith.constant 0 : index
    %3 = vector.load %arg6[%c0, %c0_5] : memref<80x256xf32, #tpu.memory_space<vmem>>, vector<80x256xf32>
    %4 = arith.truncf %3 : vector<80x256xf32> to vector<80x256xbf16>
    %c0_6 = arith.constant 0 : index
    %c0_7 = arith.constant 0 : index
    %5 = vector.load %arg3[%c0_6, %c0_7] : memref<256x256xbf16, #tpu.memory_space<vmem>>, vector<256x256xbf16>
    %cst = arith.constant dense<0.000000e+00> : vector<80x256xf32>
    %6 = tpu.matmul %4, %5, %cst {dimension_numbers = #tpu.dot_dimension_numbers<[1], [0], [0], [1], [0, 0, 1, 1], [], []>} : vector<80x256xbf16>, vector<256x256xbf16>, vector<80x256xf32> -> vector<80x256xf32>
    %c0_8 = arith.constant 0 : index
    %c0_9 = arith.constant 0 : index
    %7 = vector.load %arg4[%c0_8, %c0_9] : memref<1x256xf32, #tpu.memory_space<vmem>>, vector<1x256xf32>
    %8 = vector.broadcast %7 : vector<1x256xf32> to vector<80x256xf32>
    %9 = arith.addf %6, %8 : vector<80x256xf32>
    %c0_10 = arith.constant 0 : index
    %c0_11 = arith.constant 0 : index
    %10 = vector.load %arg5[%c0_10, %c0_11] : memref<80x256xf32, #tpu.memory_space<vmem>>, vector<80x256xf32>
    tpu.vector_store %arg5[%c0_10, %c0_11], %9 {strides = array<i32>} : memref<80x256xf32, #tpu.memory_space<vmem>>, vector<80x256xf32>,
    return
  }
  func.func @transform_1(%arg0: i32, %arg1: memref<160xi32, #tpu.memory_space<smem>>) -> (i32, i32) {
    %c0_i32 = arith.constant 0 : i32
    %c0_i32_0 = arith.constant 0 : i32
    %c0_i32_1 = arith.constant 0 : i32
    return %c0_i32, %c0_i32_0 : i32, i32
  }
  func.func @transform_2(%arg0: i32, %arg1: memref<160xi32, #tpu.memory_space<smem>>) -> (i32, i32) {
    %c0_i32 = arith.constant 0 : i32
    %c0_i32_0 = arith.constant 0 : i32
    %c0_i32_1 = arith.constant 0 : i32
    return %c0_i32, %c0_i32_0 : i32, i32
  }
  func.func @transform_3(%arg0: i32, %arg1: memref<160xi32, #tpu.memory_space<smem>>) -> (i32, i32) {
    %c0_i32 = arith.constant 0 : i32
    %c0_i32_0 = arith.constant 0 : i32
    return %arg0, %c0_i32 : i32, i32
  }
}

</mosaic_0001>

<bundles_post_ra>
// kernel: tpu_custom_call.1
= control target key start
LH: loop header
LB: loop body
LE: loop exit
PB: predicated region body
PF: predicated region fallthrough
CT: control target
= control target key end

     0   :  { %s1206_s0 = inlined_call_operand.hbm [shape: s32[160], index: 0, kind: input, shape index: {}]   ;;  %s1207_s1 = inlined_call_operand.hbm [shape: f32[256,256], index: 1, kind: input, shape index: {}]   ;;  %s1208_s2 = inlined_call_operand.hbm [shape: bf16[256,256], index: 2, kind: input, shape index: {}]   ;;  %s1209_s3 = inlined_call_operand.vmem [shape: f32[1,256], index: 3, kind: input, shape index: {}]   ;;  %s1210_s4 = inlined_call_operand.hbm [shape: f32[160,256], index: 4, kind: output, shape index: {}]  }
   0x1   :  { %1215 = sst [smem:[#allocation16_spill]] %s1208_s2  ;;  %s817_s17 = scalar_lea.hbm %s1206_s0, 32 }
   0x2   :  { %p818_p0 = scmp.ne.s32.totalorder %s1206_s0, %s817_s17  ;;  %p821_p1 = scmp.lt.u32.totalorder %s817_s17, %s1206_s0 }
   0x4   :  { %p823_p2 = pnand %p821_p1, %p818_p0 }
   0x6   :  { %826 = shalt.err (!%p823_p2)  }
   0x7   :  { %s967_s22 = smov [#allocation5]  }
   0x8   :  { %10 = dma.hbm_to_smem %s1206_s0, 32, %s967_s22, [#allocation4] }
   0x9   :  { %931 = dma.done.wait [#allocation4], 32 }
   0xa   :  { %932 = vsyncadd [#allocation4], 4294967264 }
   0xb   :  { %12 = sfence }
   0xc   :  { %13 = vsyncpa [#allocation7], 0 }
   0xd   :  { %14 = vsyncpa [#allocation8], 0 }
   0xe   :  { %16 = vsyncpa [#allocation8 + $0x1], 0  ;;  %s1014_s25 = smov 0   ;;  %s1016_s26 = smov 0  }
   0xf   :  { %s1018_s27 = smov 0   ;;  %s1020_s28 = smov 0  }
  0x10 LB: > { %s1035_s0 = sadd.s32 4294967295, %s957_s28   ;;  %s615_s29 = sadd.s32 4294967294, %s957_s28   ;;  %s957_s28 = sphi %s1020_s28, %s1233_s28   ;;  %s953_s27 = sphi %s1018_s27, %s1232_s27   ;;  %s949_s26 = sphi %s1016_s26, %s1231_s26   ;;  %s945_s25 = sphi %s1014_s25, %s1230_s25  }
  0x11   : > { %s1039_s30 = sadd.s32 1, %s957_s28   ;;  %s71_s5 = sadd.s32 1, %s953_s27 }
  0x12   : > { %s68_s6 = ssub.s32 %s957_s28, %s1039_s30  ;;  %p81_p3 = scmp.ne.s32.totalorder %s953_s27, %s949_s26 }
  0x13   : > { %p69_p4 = scmp.eq.s32.totalorder %s68_s6, 0  ;;  %p82_p5 = scmp.eq.s32.totalorder %s1035_s0, 1 }
  0x14   : > { %p87_p6 = scmp.ne.s32.totalorder %s949_s26, %s945_s25  ;;  %p88_p7 = scmp.eq.s32.totalorder %s615_s29, 1 }
  0x15   : > { %s1050_s7 = scalar_select %p69_p4, %s953_s27, %s71_s5  }
  0x16   : > { %p1052_p8 = por %p82_p5, %p81_p3  ;;  %p1056_p9 = por %p88_p7, %p87_p6 }
  0x17   : > { %1216 = sst [smem:[#allocation15_spill]] %s1050_s7  ;;  %p616_p10 = scmp.ge.s32.totalorder %s957_s28, 1 }
  0x18   : > { %s1217_s8 = scalar_select %p1052_p8, 1, 0 }
  0x19   : > { %s1218_s9 = scalar_select %p1056_p9, 1, 0 }
  0x1a   : > { %p95_p11 = scmp.lt.s32.totalorder %s957_s28, 3  ;;  %p1211_p12 = scmp.eq.s32.totalorder %s1035_s0, 0 }
  0x1b   : > { %s968_s11 = smov [#allocation6]   ;;  %s1221_s2 = sld [smem:[#allocation16_spill]] }
  0x1c   : > { %p1063_p13 = pnand %p616_p10, %p95_p11  ;;  %s107_s12 = sshll.u32 %s968_s11, 4  ;;  %s108_s12 = int_to_ptr.vmem [resolvable:$true] %s107_s12 }
  0x1e   : > { %s1219_s10 = scalar_select %p1063_p13, 1, 0 }
  0x1f   : > { %p702_p0 = pneg %p1063_p13 }
  0x21   : > { %p1071_p1 = pnand %p1211_p12, %p702_p0  ;;  %s827_s16 = scalar_lea.hbm %s1221_s2, 4096 }
  0x22   : > { %p828_p2 = scmp.ne.s32.totalorder %s1221_s2, %s827_s16  ;;  %p834_p6 = scmp.lt.u32.totalorder %s827_s16, %s1221_s2 }
  0x23   : > { %p829_p3 = pneg %p1071_p1 }
  0x25   : > { %p830_p4 = pnand %p829_p3, %p828_p2 }
  0x27   : > { %p831_p5 = pneg %p830_p4 }
  0x29   : > { %p836_p7 = pnand %p834_p6, %p831_p5 }
  0x2b   : > { %839 = shalt.err (!%p836_p7)
}
  0x2c   : > { %s840_s21 = scalar_lea.vmem %s108_s12, 4096  ;;  %p848_p12 = scmp.lt.s32.totalorder %s108_s12, %s108_s12 }
  0x2d   : > { %p841_p10 = scmp.ne.s32.totalorder %s108_s12, %s840_s21  ;;  %p849_p9 = scmp.lt.s32.totalorder %s840_s21, %s840_s21 }
  0x2f   : > { %p843_p11 = pnand %p841_p10, %p829_p3  ;;  %p850_p8 = por %p849_p9, %p848_p12 }
  0x31   : > { %p844_p0 = pneg %p843_p11 }
  0x33   : > { %p851_p13 = pnand %p850_p8, %p844_p0 }
  0x35   : > { %854 = shalt.err (!%p851_p13)
}
  0x36   : > { %s969_s22 = smov 128   ;;  %s970_s23 = smov 8  }
  0x37   : > { %705 = dma.hbm_to_vmem [thread:$0]  (!%p1071_p1), %s1221_s2, 4096, %s108_s12, [#allocation7], %s969_s22, %s969_s22, %s970_s23  }
  0x38   : > { %p1222_p2 = scmp.ne.s32.totalorder %s1219_s10, 0 }
  0x39   : > { %p1223_p4 = scmp.eq.s32.totalorder (!%p1222_p2), %s1035_s0, 0 }
  0x3a   : > { %126 = sbr.rel (%p1222_p2) target bundleno = 432 (0x1b0), region = 28 }
  0x41   : > { %934 = dma.done.wait (%p1223_p4), [#allocation7], 4096   ;;  %p1224_p3 = pmov %p1223_p4 }
  0x42   : > { %s1214_s5 = sand.u32 1, %s949_s26   ;;  %s1103_s14 = smov 0  }
  0x43   : > { %936 = vsyncadd (%p1224_p3), [#allocation7], 4294963200  ;;  %s695_s11 = smul.u32 160, %s1214_s5 }
  0x45   : > { %s1101_s13 = scalar_lea.vmem [#allocation9], %s695_s11 }
  0x46 LB: >> { %s1225_s6 = smul.u32 80, %s1035_s0  ;;  %s159_s12 = sshrl.u32 %s961_s14, 3  ;;  %s961_s14 = sphi %s1103_s14, %s150_s14  }
  0x47   : >> { %s160_s16 = sand.u32 7, %s961_s14   ;;  %s622_s17 = sshll.u32 %s159_s12, 4 }
  0x48   : >> { %s151_s10 = sadd.s32 %s961_s14, %s1225_s6  ;;  %s162_s18 = sadd.s32 %s622_s17, %s160_s16 }
  0x49   : >> { %s152_s15 = sld [smem:[#allocation5 + %s151_s10]]  ;;  %s163_s19 = scalar_lea.vmem [#allocation2], %s162_s18 }
  0x4a   : >> { %s165_s20 = sshll.u32 %s163_s19, 4  ;;  %s857_s12 = scalar_lea.hbm %s1207_s1, 8192  ;;  %s1113_s20 = int_to_ptr.vmem [resolvable:$true] %s165_s20 }
  0x4f   : >> { %s153_s21 = sshrl.u32 %s152_s15, 3  ;;  %s154_s22 = sand.u32 7, %s152_s15  }
  0x50   : >> { %s620_s23 = sshll.u32 %s153_s21, 4 }
  0x51   : >> { %s156_s24 = sadd.s32 %s620_s23, %s154_s22 }
  0x52   : >> { %s621_s29 = sshll.u32 %s156_s24, 4 }
  0x53   : >> { %s158_s2 = scalar_lea.hbm %s1207_s1, %s621_s29 }
  0x54   : >> { %s855_s7 = scalar_lea.hbm %s158_s2, 32  ;;  %p858_p9 = scmp.lt.u32.totalorder %s158_s2, %s1207_s1 }
  0x55   : >> { %p856_p8 = scmp.ne.s32.totalorder %s158_s2, %s855_s7  ;;  %p859_p12 = scmp.lt.u32.totalorder %s857_s12, %s855_s7 }
  0x56   : >> { %p861_p1 = scmp.lt.u32.totalorder %s855_s7, %s158_s2 }
  0x57   : >> { %p860_p13 = por %p859_p12, %p858_p9 }
  0x59   : >> { %p862_p5 = por %p861_p1, %p860_p13 }
  0x5b   : >> { %p863_p6 = pnand %p862_p5, %p856_p8 }
  0x5d   : >> { %866 = shalt.err (!%p863_p6)  }
  0x5e   : >> { %s867_s5 = scalar_lea.vmem %s1113_s20, 32  ;;  %s971_s15 = smov [#allocation2]  }
  0x5f   : >> { %p868_p7 = scmp.ne.s32.totalorder %s1113_s20, %s867_s5  ;;  %s869_s18 = sshll.u32 %s971_s15, 4  ;;  %s870_s18 = int_to_ptr.vmem [resolvable:$false] %s869_s18 }
  0x60   : >> { %s871_s6 = scalar_lea.vmem %s870_s18, 2560  ;;  %p872_p10 = scmp.lt.s32.totalorder %s1113_s20, %s870_s18 }
  0x61   : >> { %p873_p11 = scmp.lt.s32.totalorder %s871_s6, %s867_s5 }
  0x63   : >> { %p874_p0 = por %p873_p11, %p872_p10 }
  0x65   : >> { %p875_p2 = pnand %p874_p0, %p868_p7 }
  0x67   : >> { %878 = shalt.err (!%p875_p2)  }
  0x68   : >> { %s972_s19 = smov 128   ;;  %s973_s7 = smov 1  }
  0x69   : >> { %168 = dma.hbm_to_vmem [thread:$0]  %s158_s2, 32, %s1113_s20, [#allocation3], %s972_s19, %s972_s19, %s973_s7 }
  0x6a   : >> { %s150_s14 = sadd.s32 1, %s961_s14  }
  0x6b   : >> { %p147_p4 = scmp.ge.s32.totalorder %s150_s14, 80  }
  0x6c   : > { %s963_s21 = smov (%p147_p4), 0  }
  0x6d   : > { %149 = sbr.rel (!%p147_p4) target bundleno = 70 (0x46), region = 81 }
  0x74 LB: >> { %937 = dma.done.wait [#allocation3], 32  ;;  %s965_s21 = sphi %s963_s21, %s174_s21  }
  0x75   : >> { %938 = vsyncadd [#allocation3], 4294967264  ;;  %s174_s21 = sadd.s32 1, %s965_s21  }
  0x76   : >> { %p171_p3 = scmp.ge.s32.totalorder %s174_s21, 80  }
  0x77   : > { %v769_v0 = vld [vmem:[#allocation6 + $0x4] ss:$8 sps:$4 sm:$0xff] (%p171_p3)   ;;  %v771_v1 = vld [vmem:[#allocation6] ss:$8 sps:$4 sm:$0xff] (%p171_p3)   ;;  %v772_v2 = vld [vmem:[#allocation6 + $0x14] ss:$8 sps:$4 sm:$0xff] (%p171_p3)   ;;  %v242_v62 = vlaneseq (%p171_p3) }
  0x78   : > { %173 = sbr.rel (!%p171_p3) target bundleno = 116 (0x74), region = 92  ;;  %412 = vmatprep.subr.bf16.mxu0 (%p171_p3), %v769_v0  ;;  %663 = vmatprep.subr.bf16.mxu1 (%p171_p3), %v769_v0  ;;  %v774_v3 = vld [vmem:[#allocation6 + $0x10] ss:$8 sps:$4 sm:$0xff] (%p171_p3)   ;;  %v775_v4 = vld [vmem:[#allocation6 + $0x24] ss:$8 sps:$4 sm:$0xff] (%p171_p3)   ;;  %s530_s22 = sshll.u32 (%p171_p3), %s1101_s13, 4  ;;  %s1158_s22 = int_to_ptr.vmem [resolvable:$true] %s530_s22 }
  0x79   : > { %413 = vmatpush1.bf16.msra.mxu0 (%p171_p3), %v771_v1  ;;  %679 = vmatpush1.bf16.msra.mxu1 (%p171_p3), %v771_v1  ;;  %v777_v5 = vld [vmem:[#allocation6 + $0x20] ss:$8 sps:$4 sm:$0xff] (%p171_p3)   ;;  %v778_v6 = vld [vmem:[#allocation6 + $0x34] ss:$8 sps:$4 sm:$0xff] (%p171_p3)   ;;  %v780_v7 = vld [vmem:[#allocation6 + $0x30] ss:$8 sps:$4 sm:$0xff] (%p171_p3)  }
  0x7a   : > { %414 = vmatprep.subr.bf16.mxu0 (%p171_p3), %v772_v2  ;;  %664 = vmatprep.subr.bf16.mxu1 (%p171_p3), %v772_v2  ;;  %v781_v8 = vld [vmem:[#allocation6 + $0x44] ss:$8 sps:$4 sm:$0xff] (%p171_p3)   ;;  %v783_v9 = vld [vmem:[#allocation6 + $0x40] ss:$8 sps:$4 sm:$0xff] (%p171_p3)   ;;  %v784_v10 = vld [vmem:[#allocation6 + $0x54] ss:$8 sps:$4 sm:$0xff] (%p171_p3)  }
  0x7b   : > { %v786_v11 = vld [vmem:[#allocation6 + $0x50] ss:$8 sps:$4 sm:$0xff] (%p171_p3)   ;;  %v787_v12 = vld [vmem:[#allocation6 + $0x64] ss:$8 sps:$4 sm:$0xff] (%p171_p3)   ;;  %v789_v17 = vld [vmem:[#allocation6 + $0x60] ss:$8 sps:$4 sm:$0xff] (%p171_p3)  }
  0x7c   : > { %v179_v13 = vld [vmem:[#allocation2 + $0x8] sm:$0xff] (%p171_p3)  ;;  %v181_v14 = vld [vmem:[#allocation2 + $0x18] sm:$0xff] (%p171_p3)  ;;  %v178_v38 = vld [vmem:[#allocation2] sm:$0xff] (%p171_p3)  ;;  %v243_v63 = vshrl.u32 (%p171_p3), %v242_v62, 7  ;;  %s662_s20 = smul.u32 (%p171_p3), 2560, %s1035_s0  ;;  %s1226_s0 = sand.u32 (%p171_p3), 1, %s949_s26  }
  0x7d   : > { %415 = vmatpush1.bf16.msra.mxu0 (%p171_p3), %v774_v3  ;;  %680 = vmatpush1.bf16.msra.mxu1 (%p171_p3), %v774_v3  ;;  %v199_v15 = vpack.c.bf16 (%p171_p3), %v181_v14, %v179_v13  ;;  %v191_v16 = vld [vmem:[#allocation2 + $0x68] sm:$0xff] (%p171_p3)  ;;  %v193_v18 = vld [vmem:[#allocation2 + $0x78] sm:$0xff] (%p171_p3)  ;;  %v180_v39 = vld [vmem:[#allocation2 + $0x10] sm:$0xff] (%p171_p3)  ;;  %s1165_s11 = scalar_lea.sflag (%p171_p3), [#allocation8], %s1226_s0  ;;  %s879_s10 = scalar_lea.vmem (%p171_p3), %s1158_s22, 2560 }
  0x7e   : > { %416 = vmatprep.subr.bf16.mxu0 (%p171_p3), %v775_v4  ;;  %665 = vmatprep.subr.bf16.mxu1 (%p171_p3), %v775_v4  ;;  %v790_v19 = vld [vmem:[#allocation6 + $0x74] ss:$8 sps:$4 sm:$0xff] (%p171_p3)   ;;  %v205_v20 = vpack.c.bf16 (%p171_p3), %v193_v18, %v191_v16  ;;  %v792_v21 = vld [vmem:[#allocation6 + $0x70] ss:$8 sps:$4 sm:$0xff] (%p171_p3)   ;;  %v793_v22 = vld [vmem:[#allocation6 + $0x84] ss:$8 sps:$4 sm:$0xff] (%p171_p3)   ;;  %v198_v46 = vpack.c.bf16 (%p171_p3), %v180_v39, %v178_v38  ;;  %s1156_s29 = scalar_lea.hbm (%p171_p3), %s1210_s4, %s662_s20  ;;  %p880_p8 = scmp.ne.s32.totalorder (%p171_p3), %s1158_s22, %s879_s10 }
  0x7f   : > { %444 = vmatprep.mubr.bf16.mxu0 %v199_v15  ;;  %v795_v23 = vld [vmem:[#allocation6 + $0x80] ss:$8 sps:$4 sm:$0xff]   ;;  %v796_v24 = vld [vmem:[#allocation6 + $0x94] ss:$8 sps:$4 sm:$0xff]   ;;  %v798_v25 = vld [vmem:[#allocation6 + $0x90] ss:$8 sps:$4 sm:$0xff]  }
  0x80   : > { %474 = vmatprep.mubr.bf16.mxu1 %v205_v20  ;;  %v799_v26 = vld [vmem:[#allocation6 + $0xa4] ss:$8 sps:$4 sm:$0xff]   ;;  %v801_v27 = vld [vmem:[#allocation6 + $0xa0] ss:$8 sps:$4 sm:$0xff]   ;;  %v802_v28 = vld [vmem:[#allocation6 + $0xb4] ss:$8 sps:$4 sm:$0xff]  }
  0x81   : > { %417 = vmatpush1.bf16.msra.mxu0 %v777_v5  ;;  %681 = vmatpush1.bf16.msra.mxu1 %v777_v5  ;;  %v804_v29 = vld [vmem:[#allocation6 + $0xb0] ss:$8 sps:$4 sm:$0xff]   ;;  %v805_v30 = vld [vmem:[#allocation6 + $0xc4] ss:$8 sps:$4 sm:$0xff]   ;;  %v807_v31 = vld [vmem:[#allocation6 + $0xc0] ss:$8 sps:$4 sm:$0xff]  }
  0x82   : > { %418 = vmatprep.subr.bf16.mxu0 %v778_v6  ;;  %666 = vmatprep.subr.bf16.mxu1 %v778_v6  ;;  %v808_v32 = vld [vmem:[#allocation6 + $0xd4] ss:$8 sps:$4 sm:$0xff]   ;;  %v810_v33 = vld [vmem:[#allocation6 + $0xd0] ss:$8 sps:$4 sm:$0xff]   ;;  %v811_v34 = vld [vmem:[#allocation6 + $0xe4] ss:$8 sps:$4 sm:$0xff]  }
  0x83   : > { %v813_v35 = vld [vmem:[#allocation6 + $0xe0] ss:$8 sps:$4 sm:$0xff]   ;;  %v814_v36 = vld [vmem:[#allocation6 + $0xf4] ss:$8 sps:$4 sm:$0xff]   ;;  %v816_v37 = vld [vmem:[#allocation6 + $0xf0] ss:$8 sps:$4 sm:$0xff]  }
  0x84   : > { %v190_v40 = vld [vmem:[#allocation2 + $0x60] sm:$0xff]  ;;  %v192_v41 = vld [vmem:[#allocation2 + $0x70] sm:$0xff]  ;;  %v183_v42 = vld [vmem:[#allocation2 + $0x28] sm:$0xff]  ;;  %v244_v0 = vsub.s32 0, %v243_v63  ;;  %v248_v2 = vsub.s32 1, %v243_v63  ;;  %p1227_p9 = scmp.ne.s32.totalorder %s1217_s8, 0 }
  0x85   : > { %419 = vmatpush1.bf16.msra.mxu0 %v780_v7  ;;  %682 = vmatpush1.bf16.msra.mxu1 %v780_v7  ;;  %v185_v43 = vld [vmem:[#allocation2 + $0x38] sm:$0xff]  ;;  %v195_v44 = vld [vmem:[#allocation2 + $0x88] sm:$0xff]  ;;  %v204_v47 = vpack.c.bf16 %v192_v41, %v190_v40  ;;  %v182_v50 = vld [vmem:[#allocation2 + $0x20] sm:$0xff]  ;;  %s974_s12 = smov [#allocation9]  }
  0x86   : > { %420 = vmatprep.subr.bf16.mxu0 %v781_v8  ;;  %667 = vmatprep.subr.bf16.mxu1 %v781_v8  ;;  %v197_v45 = vld [vmem:[#allocation2 + $0x98] sm:$0xff]  ;;  %v201_v48 = vpack.c.bf16 %v185_v43, %v183_v42  ;;  %v184_v51 = vld [vmem:[#allocation2 + $0x30] sm:$0xff]  ;;  %v194_v52 = vld [vmem:[#allocation2 + $0x80] sm:$0xff]  ;;  %p881_p12 = pnand %p880_p8, %p1227_p9  ;;  %s883_s16 = sshll.u32 %s974_s12, 4  ;;  %s884_s16 = int_to_ptr.vmem [resolvable:$false] %s883_s16 }
  0x87   : > { %v207_v49 = vpack.c.bf16 %v197_v45, %v195_v44  ;;  %v196_v53 = vld [vmem:[#allocation2 + $0x90] sm:$0xff]  ;;  %v187_v54 = vld [vmem:[#allocation2 + $0x48] sm:$0xff]  ;;  %v189_v55 = vld [vmem:[#allocation2 + $0x58] sm:$0xff]  ;;  %v200_v56 = vpack.c.bf16 %v184_v51, %v182_v50  ;;  %s885_s17 = scalar_lea.vmem %s884_s16, 5120  ;;  %p886_p1 = scmp.lt.s32.totalorder %s1158_s22, %s884_s16 }
  0x88   : > { %v206_v57 = vpack.c.bf16 %v196_v53, %v194_v52  ;;  %v203_v58 = vpack.c.bf16 %v189_v55, %v187_v54  ;;  %v186_v59 = vld [vmem:[#allocation2 + $0x40] sm:$0xff]  ;;  %v188_v60 = vld [vmem:[#allocation2 + $0x50] sm:$0xff]  ;;  %p882_p13 = pneg %p881_p12  ;;  %p887_p5 = scmp.lt.s32.totalorder %s885_s17, %s879_s10 }
  0x89   : > { %421 = vmatpush1.bf16.msra.mxu0 %v783_v9  ;;  %683 = vmatpush1.bf16.msra.mxu1 %v783_v9  ;;  %v202_v61 = vpack.c.bf16 %v188_v60, %v186_v59  ;;  %v240_v1 = vld [vmem:[%s1209_s3] sm:$0x3] }
  0x8a   : > { %422 = vmatprep.subr.bf16.mxu0 %v784_v10  ;;  %668 = vmatprep.subr.bf16.mxu1 %v784_v10  ;;  %v245_v3 = vrot.slane %v240_v1, %v244_v0  ;;  %v249_v4 = vrot.slane %v240_v1, %v248_v2  ;;  %p888_p6 = por %p887_p5, %p886_p1 }
  0x8c   : > { %p889_p7 = pnand %p888_p6, %p882_p13 }
  0x8d   : > { %423 = vmatpush1.bf16.msra.mxu0 %v786_v11  ;;  %684 = vmatpush1.bf16.msra.mxu1 %v786_v11 }
  0x8e   : > { %424 = vmatprep.subr.bf16.mxu0 %v787_v12  ;;  %669 = vmatprep.subr.bf16.mxu1 %v787_v12 }
  0x91   : > { %425 = vmatpush1.bf16.msra.mxu0 %v789_v17  ;;  %685 = vmatpush1.bf16.msra.mxu1 %v789_v17 }
  0x92   : > { %426 = vmatprep.subr.bf16.mxu0 %v790_v19  ;;  %670 = vmatprep.subr.bf16.mxu1 %v790_v19 }
  0x95   : > { %427 = vmatpush1.bf16.msra.mxu0 %v792_v21  ;;  %686 = vmatpush1.bf16.msra.mxu1 %v792_v21 }
  0x96   : > { %428 = vmatprep.subr.bf16.mxu0 %v793_v22  ;;  %671 = vmatprep.subr.bf16.mxu1 %v793_v22 }
  0x99   : > { %429 = vmatpush1.bf16.msra.mxu0 %v795_v23  ;;  %687 = vmatpush1.bf16.msra.mxu1 %v795_v23 }
  0x9a   : > { %430 = vmatprep.subr.bf16.mxu0 %v796_v24  ;;  %672 = vmatprep.subr.bf16.mxu1 %v796_v24 }
  0x9d   : > { %431 = vmatpush1.bf16.msra.mxu0 %v798_v25  ;;  %688 = vmatpush1.bf16.msra.mxu1 %v798_v25 }
  0x9e   : > { %432 = vmatprep.subr.bf16.mxu0 %v799_v26  ;;  %673 = vmatprep.subr.bf16.mxu1 %v799_v26 }
  0xa1   : > { %433 = vmatpush1.bf16.msra.mxu0 %v801_v27  ;;  %689 = vmatpush1.bf16.msra.mxu1 %v801_v27 }
  0xa2   : > { %434 = vmatprep.subr.bf16.mxu0 %v802_v28  ;;  %674 = vmatprep.subr.bf16.mxu1 %v802_v28 }
  0xa5   : > { %435 = vmatpush1.bf16.msra.mxu0 %v804_v29  ;;  %690 = vmatpush1.bf16.msra.mxu1 %v804_v29 }
  0xa6   : > { %436 = vmatprep.subr.bf16.mxu0 %v805_v30  ;;  %675 = vmatprep.subr.bf16.mxu1 %v805_v30 }
  0xa9   : > { %437 = vmatpush1.bf16.msra.mxu0 %v807_v31  ;;  %691 = vmatpush1.bf16.msra.mxu1 %v807_v31 }
  0xaa   : > { %438 = vmatprep.subr.bf16.mxu0 %v808_v32  ;;  %676 = vmatprep.subr.bf16.mxu1 %v808_v32 }
  0xad   : > { %439 = vmatpush1.bf16.msra.mxu0 %v810_v33  ;;  %692 = vmatpush1.bf16.msra.mxu1 %v810_v33 }
  0xae   : > { %440 = vmatprep.subr.bf16.mxu0 %v811_v34  ;;  %677 = vmatprep.subr.bf16.mxu1 %v811_v34 }
  0xb1   : > { %441 = vmatpush1.bf16.msra.mxu0 %v813_v35  ;;  %693 = vmatpush1.bf16.msra.mxu1 %v813_v35 }
  0xb2   : > { %442 = vmatprep.subr.bf16.mxu0 %v814_v36  ;;  %678 = vmatprep.subr.bf16.mxu1 %v814_v36 }
  0xb5   : > { %443 = vmatpush1.bf16.msra.mxu0 %v816_v37  ;;  %694 = vmatpush1.bf16.msra.mxu1 %v816_v37 }
  0xb8   : > { %445 = vmatmul.mubr.bf16.vlgmr.msra.gmra.mrb[0].mxu0 %v198_v46  ;;  %475 = vmatmul.mubr.bf16.vlgmr.msra.gmra.mrb[0].mxu1 %v204_v47 }
  0xb9   : > { %454 = vmatprep.mubr.bf16.mxu0 %v201_v48  ;;  %484 = vmatprep.mubr.bf16.mxu1 %v207_v49 }
  0xc0   : > { %455 = vmatmul.mubr.bf16.gmra.mrb[4].mxu0 %v200_v56  ;;  %485 = vmatmul.mubr.bf16.gmra.mrb[4].mxu1 %v206_v57 }
  0xc1   : > { %464 = vmatprep.mubr.bf16.mxu0 %v203_v58 }
  0xc8   : > { %465 = vmatmul.mubr.bf16.gmra.mrb[8].mxu0 %v202_v61 }
 0x18b   : > { %v446_v5 = vpop.f32.mrb[0].mxu0  ;;  %v476_v6 = vpop.f32.mrb[0].mxu1 }
 0x18c   : > { %v447_v7 = vadd.f32 %v446_v5, %v245_v3  ;;  %v448_v8 = vpop.f32.mrb[1].mxu0  ;;  %v477_v9 = vadd.f32 %v476_v6, %v245_v3  ;;  %v478_v10 = vpop.f32.mrb[1].mxu1 }
 0x18d   : > { %v449_v11 = vadd.f32 %v448_v8, %v249_v4  ;;  %v450_v12 = vpop.f32.mrb[2].mxu0  ;;  %v479_v13 = vadd.f32 %v478_v10, %v249_v4  ;;  %v480_v14 = vpop.f32.mrb[2].mxu1 }
 0x18e   : > { %495 = vst [vmem:[%s1101_s13] sm:$0xff] %v447_v7  ;;  %v451_v15 = vadd.f32 %v450_v12, %v245_v3  ;;  %v452_v16 = vpop.f32.mrb[3].mxu0  ;;  %507 = vst [vmem:[%s1101_s13 + $0x60] sm:$0xff] %v477_v9  ;;  %v481_v17 = vadd.f32 %v480_v14, %v245_v3  ;;  %v482_v18 = vpop.f32.mrb[3].mxu1 }
 0x18f   : > { %496 = vst [vmem:[%s1101_s13 + $0x8] sm:$0xff] %v449_v11  ;;  %v453_v19 = vadd.f32 %v452_v16, %v249_v4  ;;  %508 = vst [vmem:[%s1101_s13 + $0x68] sm:$0xff] %v479_v13  ;;  %v483_v20 = vadd.f32 %v482_v18, %v249_v4 }
 0x190   : > { %497 = vst [vmem:[%s1101_s13 + $0x10] sm:$0xff] %v451_v15  ;;  %509 = vst [vmem:[%s1101_s13 + $0x70] sm:$0xff] %v481_v17 }
 0x191   : > { %498 = vst [vmem:[%s1101_s13 + $0x18] sm:$0xff] %v453_v19  ;;  %510 = vst [vmem:[%s1101_s13 + $0x78] sm:$0xff] %v483_v20 }
 0x193   : > { %v456_v21 = vpop.f32.mrb[4].mxu0  ;;  %v486_v22 = vpop.f32.mrb[4].mxu1 }
 0x194   : > { %v457_v23 = vadd.f32 %v456_v21, %v245_v3  ;;  %v458_v24 = vpop.f32.mrb[5].mxu0  ;;  %v487_v25 = vadd.f32 %v486_v22, %v245_v3  ;;  %v488_v26 = vpop.f32.mrb[5].mxu1 }
 0x195   : > { %v459_v27 = vadd.f32 %v458_v24, %v249_v4  ;;  %v460_v28 = vpop.f32.mrb[6].mxu0  ;;  %v489_v29 = vadd.f32 %v488_v26, %v249_v4  ;;  %v490_v30 = vpop.f32.mrb[6].mxu1 }
 0x196   : > { %499 = vst [vmem:[%s1101_s13 + $0x20] sm:$0xff] %v457_v23  ;;  %v461_v31 = vadd.f32 %v460_v28, %v245_v3  ;;  %v462_v32 = vpop.f32.mrb[7].mxu0  ;;  %511 = vst [vmem:[%s1101_s13 + $0x80] sm:$0xff] %v487_v25  ;;  %v491_v33 = vadd.f32 %v490_v30, %v245_v3  ;;  %v492_v34 = vpop.f32.mrb[7].mxu1 }
 0x197   : > { %500 = vst [vmem:[%s1101_s13 + $0x28] sm:$0xff] %v459_v27  ;;  %v463_v35 = vadd.f32 %v462_v32, %v249_v4  ;;  %512 = vst [vmem:[%s1101_s13 + $0x88] sm:$0xff] %v489_v29  ;;  %v493_v36 = vadd.f32 %v492_v34, %v249_v4 }
 0x198   : > { %501 = vst [vmem:[%s1101_s13 + $0x30] sm:$0xff] %v461_v31  ;;  %513 = vst [vmem:[%s1101_s13 + $0x90] sm:$0xff] %v491_v33 }
 0x199   : > { %502 = vst [vmem:[%s1101_s13 + $0x38] sm:$0xff] %v463_v35  ;;  %514 = vst [vmem:[%s1101_s13 + $0x98] sm:$0xff] %v493_v36 }
 0x19b   : > { %v466_v37 = vpop.f32.mrb[8].mxu0 }
 0x19c   : > { %v467_v38 = vadd.f32 %v466_v37, %v245_v3  ;;  %v468_v39 = vpop.f32.mrb[9].mxu0 }
 0x19d   : > { %v469_v40 = vadd.f32 %v468_v39, %v249_v4  ;;  %v470_v41 = vpop.f32.mrb[10].mxu0 }
 0x19e   : > { %503 = vst [vmem:[%s1101_s13 + $0x40] sm:$0xff] %v467_v38  ;;  %v471_v42 = vadd.f32 %v470_v41, %v245_v3  ;;  %v472_v43 = vpop.f32.mrb[11].mxu0 }
 0x19f   : > { %504 = vst [vmem:[%s1101_s13 + $0x48] sm:$0xff] %v469_v40  ;;  %v473_v44 = vadd.f32 %v472_v43, %v249_v4 }
 0x1a0   : > { %505 = vst [vmem:[%s1101_s13 + $0x50] sm:$0xff] %v471_v42 }
 0x1a1   : > { %506 = vst [vmem:[%s1101_s13 + $0x58] sm:$0xff] %v473_v44 }
 0x1a2   : > { %892 = shalt.err (!%p889_p7)
}
 0x1a3   : > { %s893_s13 = scalar_lea.hbm %s1156_s29, 2560  ;;  %s897_s18 = scalar_lea.hbm %s1210_s4, 5120 }
 0x1a4   : > { %p894_p10 = scmp.ne.s32.totalorder %s1156_s29, %s893_s13  ;;  %p898_p2 = scmp.lt.u32.totalorder %s1156_s29, %s1210_s4 }
 0x1a5   : > { %p899_p4 = scmp.lt.u32.totalorder %s897_s18, %s893_s13  ;;  %p901_p8 = scmp.lt.u32.totalorder %s893_s13, %s1156_s29 }
 0x1a6   : > { %p895_p11 = pnand %p894_p10, %p1227_p9 }
 0x1a7   : > { %p900_p3 = por %p899_p4, %p898_p2 }
 0x1a8   : > { %p896_p0 = pneg %p895_p11 }
 0x1a9   : > { %p902_p12 = por %p901_p8, %p900_p3 }
 0x1ab   : > { %p903_p13 = pnand %p902_p12, %p896_p0 }
 0x1ad   : > { %906 = shalt.err (!%p903_p13)
}
 0x1ae   : > { %s975_s7 = smov 256   ;;  %s976_s21 = smov 16  }
 0x1af   : > { %700 = dma.vmem_to_hbm [thread:$0]  (%p1227_p9), %s1158_s22, 2560, %s1156_s29, %s1165_s11, %s975_s7, %s975_s7, %s976_s21  }
 0x1b0 PF: > { %p712_p1 = scmp.ge.s32.totalorder %s957_s28, 2  ;;  %s545_s2 = sand.u32 1, %s945_s25  }
 0x1b1   : > { %p1228_p5 = scmp.ne.s32.totalorder %s1218_s9, 0  ;;  %s546_s14 = scalar_lea.sflag [#allocation8], %s545_s2 }
 0x1b3   : > { %p707_p6 = pnand %p712_p1, %p1228_p5 }
 0x1b5   : > { %940 = dma.done.wait (!%p707_p6), %s546_s14, 2560  }
 0x1b6   : > { %942 = vsyncadd (!%p707_p6), %s546_s14, 4294964736  ;;  %s1229_s20 = sld [smem:[#allocation15_spill]]  ;;  %p19_p7 = scmp.ge.s32.totalorder %s1039_s30, 4  }
 0x1b7   : > { %s1230_s25 = smov %s949_s26  ;;  %s1231_s26 = smov %s953_s27 }
 0x1b8   : > { %s1233_s28 = smov %s1039_s30  ;;  %21 = sbr.rel (!%p19_p7) target bundleno = 16 (0x10), region = 103 }
 0x1bc   : > { %s1232_s27 = smov %s1229_s20 }
 0x1bf   :  { %551 = vsyncpa [#allocation7], 1 }
 0x1c0   :  { %553 = vsyncpa [#allocation7 + $0x1], 1 }
 0x1c1   :  { %554 = vsyncpa [#allocation8], 1 }
 0x1c2   :  { %556 = vsyncpa [#allocation8 + $0x1], 1 }
 0x1c3   :  { %557 = vsyncmov [#allocation3] }
 0x1c6   :  { %s558_s28 = vpop.sfrf %557 }
 0x1c7   :  { %p659_p9 = scmp.ne.s32.totalorder %s558_s28, 0 }
 0x1c9   :  { %562 = shalt.err (%p659_p9)  }

</bundles_post_ra>
